<compile_context>
chip_gen: v7x
topology: tpu7x:2x2x1
jax: 0.10.0
libtpu: 0.0.40
codegen_flags: <defaults>
</compile_context>

<pallas_src>
import jax
import jax.numpy as jnp
from jax.experimental import pallas as pl
from jax.experimental.pallas import tpu as pltpu


def _make_variance_kernel(patch_size: int, channels: int):
    p = patch_size
    half = p // 2

    def box_mean(a):
        # a: (H, W) f32 -> valid PxP box mean, shape (H-p+1, W-p+1).
        # Unrolled static slices: p is tiny (default 5), so this is p shifted
        # adds per axis on the VPU (separable box filter).
        h, w = a.shape
        w1 = w - p + 1
        h1 = h - p + 1
        row = a[:, 0:w1]
        for dj in range(1, p):
            row = row + a[:, dj:dj + w1]
        box = row[0:h1, :]
        for di in range(1, p):
            box = box + row[di:di + h1, :]
        return box * (1.0 / float(p * p))

    def kernel(x_ref, o_ref):
        # x_ref: (1, C, H, W) block (one batch element); o_ref: (1, C, H2, W2).
        x = x_ref[0].astype(jnp.float32)            # (C, H, W)
        s = jnp.sum(x, axis=0)                      # channel sum, (H, W)
        m1 = box_mean(s)                            # E[x] over each patch
        h1, w1 = m1.shape
        center = s[half:half + h1, half:half + w1]  # conv with ones_mask
        v = center - m1                             # Ex_E (same for every c)
        m2 = box_mean(v * v)                        # E[(x - E[x])^2]
        out = (m2 * float(channels)).astype(o_ref.dtype)
        # every output channel is identical (masks are constant over channels)
        o_ref[...] = jnp.broadcast_to(out[None, None, :, :], o_ref.shape)

    return kernel


def variance_layer(x, patch_size: int = 5):
    """Pallas equivalent of VarianceLayer(patch_size, channels)(x)."""
    n, c, h, w = x.shape
    h2 = h - 2 * (patch_size - 1)
    w2 = w - 2 * (patch_size - 1)
    assert h2 > 0 and w2 > 0, "image too small for two valid PxP convolutions"

    kernel = _make_variance_kernel(patch_size, c)
    return pl.pallas_call(
        kernel,
        out_shape=jax.ShapeDtypeStruct((n, c, h2, w2), x.dtype),
        grid=(n,),
        in_specs=[pl.BlockSpec((1, c, h, w), lambda i: (i, 0, 0, 0))],
        out_specs=pl.BlockSpec((1, c, h2, w2), lambda i: (i, 0, 0, 0)),
        compiler_params=pltpu.CompilerParams(
            dimension_semantics=("parallel",),
        ),
    )(x)


def _variance_reference(x, patch_size: int = 5):
    # Pure-JAX reference matching the PyTorch module literally.
    n, c, h, w = x.shape
    p = patch_size
    mean_mask = jnp.ones((c, c, p, p), jnp.float32) / float(p * p)
    ones_mask = jnp.zeros((c, c, p, p), jnp.float32).at[:, :, p // 2, p // 2].set(1.0)

    def conv(a, k):
        return jax.lax.conv_general_dilated(
            a.astype(jnp.float32), k, window_strides=(1, 1), padding="VALID",
            dimension_numbers=("NCHW", "OIHW", "NCHW"))

    ex_e = conv(x, ones_mask) - conv(x, mean_mask)
    return conv(ex_e ** 2, mean_mask).astype(x.dtype)


if __name__ == "__main__":
    key = jax.random.PRNGKey(0)
    # Module defaults: patch_size=5, channels=1.  Small NCHW feature map.
    x = jax.random.normal(key, (2, 1, 16, 16), dtype=jnp.float32)

    out = variance_layer(x, patch_size=5)
    out = jax.block_until_ready(out)

    assert out.shape == (2, 1, 8, 8), out.shape
    assert out.dtype == x.dtype, out.dtype

    ref = _variance_reference(x, patch_size=5)
    err = float(jnp.max(jnp.abs(out - ref)))
    assert jnp.allclose(out, ref, atol=1e-5, rtol=1e-5), f"max abs err {err}"

    print("KERNEL_OK")
</pallas_src>

<mosaic_0001>
module attributes {stable_mosaic.version = 11 : i64} {
  func.func @kernel(%arg0: i32, %arg1: memref<1x1x16x16xf32, #tpu.memory_space<vmem>>, %arg2: memref<1x1x8x8xf32, #tpu.memory_space<vmem>>) attributes {dimension_semantics = [#tpu.dimension_semantics<parallel>], iteration_bounds = array<i64: 2>, scalar_prefetch = 0 : i64, scratch_operands = 0 : i64, tpu.core_type = #tpu.core_type<tc>, window_params = [{transform_indices = @transform_0, window_bounds = array<i64: 1, 1, 16, 16>}, {transform_indices = @transform_1, window_bounds = array<i64: 1, 1, 8, 8>}]} {
    %c0 = arith.constant 0 : index
    %c0_0 = arith.constant 0 : index
    %c0_1 = arith.constant 0 : index
    %c0_2 = arith.constant 0 : index
    %0 = vector.load %arg1[%c0, %c0_0, %c0_1, %c0_2] : memref<1x1x16x16xf32, #tpu.memory_space<vmem>>, vector<1x1x16x16xf32>
    %1 = vector.shape_cast %0 : vector<1x1x16x16xf32> to vector<1x16x16xf32>
    %cst = arith.constant dense<0.000000e+00> : vector<16x16xf32>
    %2 = vector.multi_reduction <add>, %1, %cst [0] : vector<1x16x16xf32> to vector<16x16xf32>
    %3 = vector.extract_strided_slice %2 {offsets = [0, 0], sizes = [16, 12], strides = [1, 1]} : vector<16x16xf32> to vector<16x12xf32>
    %4 = vector.extract_strided_slice %2 {offsets = [0, 1], sizes = [16, 12], strides = [1, 1]} : vector<16x16xf32> to vector<16x12xf32>
    %5 = arith.addf %3, %4 : vector<16x12xf32>
    %6 = vector.extract_strided_slice %2 {offsets = [0, 2], sizes = [16, 12], strides = [1, 1]} : vector<16x16xf32> to vector<16x12xf32>
    %7 = arith.addf %5, %6 : vector<16x12xf32>
    %8 = vector.extract_strided_slice %2 {offsets = [0, 3], sizes = [16, 12], strides = [1, 1]} : vector<16x16xf32> to vector<16x12xf32>
    %9 = arith.addf %7, %8 : vector<16x12xf32>
    %10 = vector.extract_strided_slice %2 {offsets = [0, 4], sizes = [16, 12], strides = [1, 1]} : vector<16x16xf32> to vector<16x12xf32>
    %11 = arith.addf %9, %10 : vector<16x12xf32>
    %12 = vector.extract_strided_slice %11 {offsets = [0, 0], sizes = [12, 12], strides = [1, 1]} : vector<16x12xf32> to vector<12x12xf32>
    %13 = vector.extract_strided_slice %11 {offsets = [1, 0], sizes = [12, 12], strides = [1, 1]} : vector<16x12xf32> to vector<12x12xf32>
    %14 = arith.addf %12, %13 : vector<12x12xf32>
    %15 = vector.extract_strided_slice %11 {offsets = [2, 0], sizes = [12, 12], strides = [1, 1]} : vector<16x12xf32> to vector<12x12xf32>
    %16 = arith.addf %14, %15 : vector<12x12xf32>
    %17 = vector.extract_strided_slice %11 {offsets = [3, 0], sizes = [12, 12], strides = [1, 1]} : vector<16x12xf32> to vector<12x12xf32>
    %18 = arith.addf %16, %17 : vector<12x12xf32>
    %19 = vector.extract_strided_slice %11 {offsets = [4, 0], sizes = [12, 12], strides = [1, 1]} : vector<16x12xf32> to vector<12x12xf32>
    %20 = arith.addf %18, %19 : vector<12x12xf32>
    %cst_3 = arith.constant 4.000000e-02 : f32
    %21 = vector.broadcast %cst_3 : f32 to vector<12x12xf32>
    %22 = arith.mulf %20, %21 : vector<12x12xf32>
    %23 = vector.extract_strided_slice %2 {offsets = [2, 2], sizes = [12, 12], strides = [1, 1]} : vector<16x16xf32> to vector<12x12xf32>
    %24 = arith.subf %23, %22 : vector<12x12xf32>
    %25 = arith.mulf %24, %24 : vector<12x12xf32>
    %26 = vector.extract_strided_slice %25 {offsets = [0, 0], sizes = [12, 8], strides = [1, 1]} : vector<12x12xf32> to vector<12x8xf32>
    %27 = vector.extract_strided_slice %25 {offsets = [0, 1], sizes = [12, 8], strides = [1, 1]} : vector<12x12xf32> to vector<12x8xf32>
    %28 = arith.addf %26, %27 : vector<12x8xf32>
    %29 = vector.extract_strided_slice %25 {offsets = [0, 2], sizes = [12, 8], strides = [1, 1]} : vector<12x12xf32> to vector<12x8xf32>
    %30 = arith.addf %28, %29 : vector<12x8xf32>
    %31 = vector.extract_strided_slice %25 {offsets = [0, 3], sizes = [12, 8], strides = [1, 1]} : vector<12x12xf32> to vector<12x8xf32>
    %32 = arith.addf %30, %31 : vector<12x8xf32>
    %33 = vector.extract_strided_slice %25 {offsets = [0, 4], sizes = [12, 8], strides = [1, 1]} : vector<12x12xf32> to vector<12x8xf32>
    %34 = arith.addf %32, %33 : vector<12x8xf32>
    %35 = vector.extract_strided_slice %34 {offsets = [0, 0], sizes = [8, 8], strides = [1, 1]} : vector<12x8xf32> to vector<8x8xf32>
    %36 = vector.extract_strided_slice %34 {offsets = [1, 0], sizes = [8, 8], strides = [1, 1]} : vector<12x8xf32> to vector<8x8xf32>
    %37 = arith.addf %35, %36 : vector<8x8xf32>
    %38 = vector.extract_strided_slice %34 {offsets = [2, 0], sizes = [8, 8], strides = [1, 1]} : vector<12x8xf32> to vector<8x8xf32>
    %39 = arith.addf %37, %38 : vector<8x8xf32>
    %40 = vector.extract_strided_slice %34 {offsets = [3, 0], sizes = [8, 8], strides = [1, 1]} : vector<12x8xf32> to vector<8x8xf32>
    %41 = arith.addf %39, %40 : vector<8x8xf32>
    %42 = vector.extract_strided_slice %34 {offsets = [4, 0], sizes = [8, 8], strides = [1, 1]} : vector<12x8xf32> to vector<8x8xf32>
    %43 = arith.addf %41, %42 : vector<8x8xf32>
    %cst_4 = arith.constant 4.000000e-02 : f32
    %44 = vector.broadcast %cst_4 : f32 to vector<8x8xf32>
    %45 = arith.mulf %43, %44 : vector<8x8xf32>
    %cst_5 = arith.constant 1.000000e+00 : f32
    %46 = vector.broadcast %cst_5 : f32 to vector<8x8xf32>
    %47 = arith.mulf %45, %46 : vector<8x8xf32>
    %48 = vector.shape_cast %47 : vector<8x8xf32> to vector<1x1x8x8xf32>
    %c0_6 = arith.constant 0 : index
    %c0_7 = arith.constant 0 : index
    %c0_8 = arith.constant 0 : index
    %c0_9 = arith.constant 0 : index
    %49 = vector.load %arg2[%c0_6, %c0_7, %c0_8, %c0_9] : memref<1x1x8x8xf32, #tpu.memory_space<vmem>>, vector<1x1x8x8xf32>
    tpu.vector_store %arg2[%c0_6, %c0_7, %c0_8, %c0_9], %48 {strides = array<i32>} : memref<1x1x8x8xf32, #tpu.memory_space<vmem>>, vector<1x1x8x8xf32>,
    return
  }
  func.func @transform_0(%arg0: i32) -> (i32, i32, i32, i32) {
    %c0_i32 = arith.constant 0 : i32
    %c0_i32_0 = arith.constant 0 : i32
    %c0_i32_1 = arith.constant 0 : i32
    %c0_i32_2 = arith.constant 0 : i32
    return %arg0, %c0_i32, %c0_i32_0, %c0_i32_1 : i32, i32, i32, i32
  }
  func.func @transform_1(%arg0: i32) -> (i32, i32, i32, i32) {
    %c0_i32 = arith.constant 0 : i32
    %c0_i32_0 = arith.constant 0 : i32
    %c0_i32_1 = arith.constant 0 : i32
    %c0_i32_2 = arith.constant 0 : i32
    return %arg0, %c0_i32, %c0_i32_0, %c0_i32_1 : i32, i32, i32, i32
  }
}

</mosaic_0001>

<bundles_post_ra>
// kernel: tpu_custom_call.1
= control target key start
LH: loop header
LB: loop body
LE: loop exit
PB: predicated region body
PF: predicated region fallthrough
CT: control target
= control target key end

     0   :  { %6 = vsyncpa [#allocation3], 0  ;;  %s766_s0 = inlined_call_operand.hbm [shape: f32[2,1,16,16], index: 0, kind: input, shape index: {}]   ;;  %s767_s1 = inlined_call_operand.hbm [shape: f32[2,1,8,8], index: 1, kind: output, shape index: {}]  }
   0x1   :  { %8 = vsyncpa [#allocation3 + $0x1], 0 }
   0x2   :  { %9 = vsyncpa [#allocation4], 0 }
   0x3   :  { %11 = vsyncpa [#allocation4 + $0x1], 0  ;;  %s571_s6 = smov 0   ;;  %s573_s7 = smov 0  }
   0x4   :  { %s575_s8 = smov 0   ;;  %s577_s9 = smov 0  }
   0x5 LB: > { %s592_s10 = sadd.s32 4294967295, %s550_s9   ;;  %s387_s11 = sadd.s32 4294967294, %s550_s9   ;;  %s550_s9 = sphi %s577_s9, %s780_s9   ;;  %s546_s8 = sphi %s575_s8, %s779_s8   ;;  %s542_s7 = sphi %s573_s7, %s778_s7   ;;  %s538_s6 = sphi %s571_s6, %s777_s6  }
   0x6   : > { %s596_s12 = sadd.s32 1, %s550_s9   ;;  %s24_s13 = sadd.s32 1, %s546_s8 }
   0x7   : > { %s21_s14 = ssub.s32 %s550_s9, %s596_s12  ;;  %p31_p0 = scmp.ne.s32.totalorder %s546_s8, %s542_s7 }
   0x8   : > { %p22_p1 = scmp.eq.s32.totalorder %s21_s14, 0  ;;  %p32_p2 = scmp.eq.s32.totalorder %s550_s9, 0 }
   0x9   : > { %p37_p3 = scmp.ne.s32.totalorder %s542_s7, %s538_s6  ;;  %p38_p4 = scmp.eq.s32.totalorder %s592_s10, 0 }
   0xa   : > { %s608_s15 = scalar_select %p22_p1, %s546_s8, %s24_s13  }
   0xb   : > { %p610_p5 = por %p32_p2, %p31_p0  ;;  %p614_p6 = por %p38_p4, %p37_p3 }
   0xc   : > { %p61_p7 = scmp.eq.s32.totalorder %s592_s10, 1  ;;  %p67_p8 = scmp.eq.s32.totalorder %s387_s11, 1 }
   0xd   : > { %p413_p10 = scmp.lt.s32.totalorder %s550_s9, 2  ;;  %s87_s20 = sand.u32 1, %s546_s8  }
   0xe   : > { %p621_p11 = por %p61_p7, %p31_p0  ;;  %p625_p12 = por %p67_p8, %p37_p3 }
   0xf   : > { %s400_s21 = sshll.u32 %s550_s9, 8  ;;  %s390_s22 = sshll.u32 %s87_s20, 4 }
  0x10   : > { %s771_s18 = scalar_select %p621_p11, 1, 0 }
  0x11   : > { %s772_s19 = scalar_select %p625_p12, 1, 0 }
  0x12   : > { %s634_s25 = scalar_lea.hbm %s766_s0, %s400_s21  ;;  %s91_s26 = scalar_lea.vmem [#allocation2], %s390_s22 }
  0x13   : > { %s98_s27 = sshll.u32 %s91_s26, 4  ;;  %p638_p13 = pnand %p413_p10, %p610_p5  ;;  %s642_s27 = int_to_ptr.vmem [resolvable:$true] %s98_s27 }
  0x14   : > { %s644_s29 = scalar_lea.sflag [#allocation3], %s87_s20  ;;  %s454_s30 = scalar_lea.hbm %s634_s25, 256 }
  0x15   : > { %p455_p0 = scmp.ne.s32.totalorder %s634_s25, %s454_s30  ;;  %p456_p1 = pneg %p638_p13 }
  0x16   : > { %s459_s4 = scalar_lea.hbm %s766_s0, 512  ;;  %p460_p4 = scmp.lt.u32.totalorder %s634_s25, %s766_s0 }
  0x17   : > { %p457_p2 = pnand %p456_p1, %p455_p0  ;;  %p461_p5 = scmp.lt.u32.totalorder %s459_s4, %s454_s30 }
  0x18   : > { %p463_p8 = scmp.lt.u32.totalorder %s454_s30, %s634_s25 }
  0x19   : > { %p458_p3 = pneg %p457_p2  ;;  %p462_p7 = por %p461_p5, %p460_p4 }
  0x1b   : > { %p464_p10 = por %p463_p8, %p462_p7 }
  0x1d   : > { %p465_p9 = pnand %p464_p10, %p458_p3 }
  0x1f   : > { %468 = shalt.err (!%p465_p9)
}
  0x20   : > { %s469_s13 = scalar_lea.vmem %s642_s27, 256  ;;  %s552_s14 = smov [#allocation2]  }
  0x21   : > { %p470_p0 = scmp.ne.s32.totalorder %s642_s27, %s469_s13  ;;  %s474_s16 = sshll.u32 %s552_s14, 4  ;;  %s475_s16 = int_to_ptr.vmem [resolvable:$false] %s474_s16 }
  0x22   : > { %s476_s20 = scalar_lea.vmem %s475_s16, 512  ;;  %p477_p11 = scmp.lt.s32.totalorder %s642_s27, %s475_s16 }
  0x23   : > { %p472_p2 = pnand %p470_p0, %p456_p1  ;;  %p478_p4 = scmp.lt.s32.totalorder %s476_s20, %s469_s13 }
  0x25   : > { %p473_p12 = pneg %p472_p2  ;;  %p479_p5 = por %p478_p4, %p477_p11 }
  0x27   : > { %p480_p7 = pnand %p479_p5, %p473_p12 }
  0x29   : > { %483 = shalt.err (!%p480_p7)
}
  0x2a   : > { %s553_s21 = smov 128   ;;  %s554_s22 = smov 8  }
  0x2b   : > { %408 = dma.hbm_to_vmem [thread:$0]  (!%p638_p13), %s634_s25, 256, %s642_s27, %s644_s29, %s553_s21, %s553_s21, %s554_s22  }
  0x2c   : > { %p393_p9 = scmp.ge.s32.totalorder %s550_s9, 1  ;;  %p106_p1 = scmp.lt.s32.totalorder %s550_s9, 3 }
  0x2e   : > { %p107_p3 = pnand %p393_p9, %p106_p1 }
  0x2f   : > { %s675_s23 = sand.u32 (!%p107_p3), 1, %s542_s7  }
  0x30   : > { %110 = sbr.rel (%p107_p3) target bundleno = 592 (0x250), region = 24  ;;  %s394_s24 = sshll.u32 (!%p107_p3), %s675_s23, 4 }
  0x31   : > { %s113_s26 = scalar_lea.sflag (!%p107_p3), [#allocation3], %s675_s23  ;;  %s116_s30 = scalar_lea.vmem (!%p107_p3), [#allocation2], %s394_s24 }
  0x37   : > { %529 = dma.done.wait (%p614_p6), %s113_s26, 256  }
  0x38   : > { %531 = vsyncadd (%p614_p6), %s113_s26, 4294967040  ;;  %v683_v0 = vld [vmem:[%s116_s30] sm:$0xff]  ;;  %s555_s25 = smov 126   ;;  %s556_s27 = smov 127   ;;  %v136_v1 = vld [vmem:[%s116_s30 + $0x8] sm:$0xff]  ;;  %vm175_vm0 = vcmask 1046528  }
  0x39   : > { %149 = vrot.lane.b32.xlu1 %v683_v0, %s555_s25  ;;  %141 = vrot.lane.b32.xlu0 %v683_v0, %s556_s27  ;;  %s557_s28 = smov 125   ;;  %s558_s17 = smov 124   ;;  %vm183_vm1 = vcmask 1045504   ;;  %vm191_vm2 = vcmask 1044480   ;;  %vm199_vm3 = vcmask 1043456   ;;  %vm211_vm4 = vcmask 1041408  }
  0x3a   : > { %s559_s29 = smov 2   ;;  %s395_s2 = sshll.u32 %s675_s23, 3  ;;  %vm301_vm5 = vcmask 58368   ;;  %vm299_vm6 = vcmask 64514  }
  0x3b   : > { %s397_s3 = sshll.u32 %s592_s10, 7  ;;  %s134_s4 = scalar_lea.vmem [#allocation5], %s395_s2 }
  0x3c   : > { %s317_s5 = sshll.u32 %s134_s4, 4  ;;  %s722_s14 = scalar_lea.hbm %s767_s1, %s397_s3  ;;  %s724_s5 = int_to_ptr.vmem [resolvable:$true] %s317_s5 }
  0x3d   : > { %151 = vrot.lane.b32.xlu1 %v136_v1, %s555_s25  ;;  %143 = vrot.lane.b32.xlu0 %v136_v1, %s556_s27  ;;  %s304_s16 = scalar_lea.sflag [#allocation4], %s675_s23  ;;  %s484_s10 = scalar_lea.vmem %s724_s5, 128 }
  0x3e   : > { %p485_p6 = scmp.ne.s32.totalorder %s724_s5, %s484_s10  ;;  %p774_p11 = scmp.ne.s32.totalorder %s771_s18, 0 }
  0x3f   : > { %s560_s20 = smov [#allocation5]  }
  0x40   : > { %p486_p12 = pnand %p485_p6, %p774_p11  ;;  %s488_s21 = sshll.u32 %s560_s20, 4  ;;  %s489_s21 = int_to_ptr.vmem [resolvable:$false] %s488_s21 }
  0x41   : > { %159 = vrot.lane.b32.xlu1 %v136_v1, %s557_s28  ;;  %157 = vrot.lane.b32.xlu0 %v683_v0, %s557_s28  ;;  %s490_s22 = scalar_lea.vmem %s489_s21, 256  ;;  %p491_p8 = scmp.lt.s32.totalorder %s724_s5, %s489_s21 }
  0x42   : > { %p487_p13 = pneg %p486_p12  ;;  %p492_p10 = scmp.lt.s32.totalorder %s490_s22, %s484_s10 }
  0x44   : > { %p493_p0 = por %p492_p10, %p491_p8 }
  0x45   : > { %167 = vrot.lane.b32.xlu1 %v136_v1, %s558_s17  ;;  %165 = vrot.lane.b32.xlu0 %v683_v0, %s558_s17 }
  0x46   : > { %p494_p2 = pnand %p493_p0, %p487_p13 }
  0xab   : > { %v150_v2 = vpop.permute.xlu1 %149  ;;  %v142_v3 = vpop.permute.xlu0 %141 }
  0xac   : > { %v147_v6 = vadd.f32 %v142_v3, %v683_v0 }
  0xae   : > { %v155_v11 = vadd.f32 %v150_v2, %v147_v6 }
  0xaf   : > { %v152_v4 = vpop.permute.xlu1 %151  ;;  %v144_v5 = vpop.permute.xlu0 %143 }
  0xb0   : > { %v148_v7 = vadd.f32 %v144_v5, %v136_v1 }
  0xb2   : > { %v156_v8 = vadd.f32 %v152_v4, %v148_v7 }
  0xb3   : > { %v160_v9 = vpop.permute.xlu1 %159  ;;  %v158_v10 = vpop.permute.xlu0 %157 }
  0xb4   : > { %v164_v12 = vadd.f32 %v160_v9, %v156_v8  ;;  %v163_v13 = vadd.f32 %v158_v10, %v155_v11 }
  0xb7   : > { %v168_v14 = vpop.permute.xlu1 %167  ;;  %v166_v15 = vpop.permute.xlu0 %165 }
  0xb8   : > { %v172_v16 = vadd.f32 %v168_v14, %v164_v12  ;;  %v171_v17 = vadd.f32 %v166_v15, %v163_v13 }
  0xba   : > { %v177_v18 = vrot.slane %v172_v16, 1  ;;  %v185_v19 = vrot.slane %v172_v16, 2  ;;  %v176_v20 = vrot.slane %v171_v17, 1  ;;  %v184_v21 = vrot.slane %v171_v17, 2 }
  0xbb   : > { %v192_v24 = vrot.slane %v171_v17, 3  ;;  %v193_v25 = vrot.slane %v172_v16, 3  ;;  %v200_v28 = vrot.slane %v171_v17, 4  ;;  %v201_v29 = vrot.slane %v172_v16, 4 }
  0xbc   : > { %v182_v22 = vadd.f32 %v177_v18, %v172_v16  ;;  %v178_v23 = vsel %vm175_vm0, %v176_v20, %v177_v18  ;;  %v186_v27 = vsel %vm183_vm1, %v184_v21, %v185_v19 }
  0xbd   : > { %v181_v26 = vadd.f32 %v178_v23, %v171_v17  ;;  %v194_v32 = vsel %vm191_vm2, %v192_v24, %v193_v25  ;;  %v202_v35 = vsel %vm199_vm3, %v200_v28, %v201_v29 }
  0xbe   : > { %v190_v30 = vadd.f32 %v185_v19, %v182_v22 }
  0xbf   : > { %v189_v31 = vadd.f32 %v186_v27, %v181_v26 }
  0xc0   : > { %v198_v33 = vadd.f32 %v193_v25, %v190_v30 }
  0xc1   : > { %v197_v34 = vadd.f32 %v194_v32, %v189_v31 }
  0xc2   : > { %v206_v36 = vadd.f32 %v201_v29, %v198_v33 }
  0xc3   : > { %v205_v37 = vadd.f32 %v202_v35, %v197_v34 }
  0xc4   : > { %v208_v38 = vmul.f32 0.04, %v206_v36 }
  0xc5   : > { %v207_v39 = vmul.f32 0.04, %v205_v37 }
  0xc6   : > { %v213_v40 = vrot.slane %v208_v38, 6 }
  0xc7   : > { %v212_v41 = vrot.slane %v207_v39, 6 }
  0xc9   : > { %215 = vrot.lane.b32.xlu0 %v212_v41, %s559_s29  ;;  %v214_v42 = vsel %vm211_vm4, %v212_v41, %v213_v40 }
  0xca   : > { %217 = vrot.lane.b32.xlu1 %v214_v42, %s559_s29 }
 0x13b   : > { %v216_v43 = vpop.permute.xlu0 %215 }
 0x13c   : > { %v221_v44 = vsub.f32 %v683_v0, %v216_v43  ;;  %v218_v45 = vpop.permute.xlu1 %217 }
 0x13d   : > { %v222_v46 = vsub.f32 %v136_v1, %v218_v45 }
 0x13e   : > { %v223_v47 = vmul.f32 %v221_v44, %v221_v44 }
 0x13f   : > { %v224_v48 = vmul.f32 %v222_v46, %v222_v46 }
 0x140   : > { %227 = vrot.lane.b32.xlu0 %v223_v47, %s556_s27 }
 0x141   : > { %229 = vrot.lane.b32.xlu1 %v224_v48, %s556_s27 }
 0x144   : > { %235 = vrot.lane.b32.xlu0 %v223_v47, %s555_s25 }
 0x145   : > { %237 = vrot.lane.b32.xlu1 %v224_v48, %s555_s25 }
 0x148   : > { %243 = vrot.lane.b32.xlu0 %v223_v47, %s557_s28 }
 0x149   : > { %245 = vrot.lane.b32.xlu1 %v224_v48, %s557_s28 }
 0x14c   : > { %251 = vrot.lane.b32.xlu0 %v223_v47, %s558_s17 }
 0x14d   : > { %253 = vrot.lane.b32.xlu1 %v224_v48, %s558_s17 }
 0x1b2   : > { %v228_v49 = vpop.permute.xlu0 %227 }
 0x1b3   : > { %v230_v50 = vpop.permute.xlu1 %229  ;;  %v233_v53 = vadd.f32 %v228_v49, %v223_v47 }
 0x1b4   : > { %v234_v54 = vadd.f32 %v230_v50, %v224_v48 }
 0x1b6   : > { %v236_v51 = vpop.permute.xlu0 %235 }
 0x1b7   : > { %v238_v52 = vpop.permute.xlu1 %237  ;;  %v241_v56 = vadd.f32 %v236_v51, %v233_v53 }
 0x1b8   : > { %v242_v58 = vadd.f32 %v238_v52, %v234_v54 }
 0x1ba   : > { %v244_v55 = vpop.permute.xlu0 %243 }
 0x1bb   : > { %v246_v57 = vpop.permute.xlu1 %245  ;;  %v249_v59 = vadd.f32 %v244_v55, %v241_v56 }
 0x1bc   : > { %v250_v60 = vadd.f32 %v246_v57, %v242_v58 }
 0x1be   : > { %v252_v61 = vpop.permute.xlu0 %251 }
 0x1bf   : > { %v257_v62 = vadd.f32 %v252_v61, %v249_v59  ;;  %v254_v63 = vpop.permute.xlu1 %253 }
 0x1c0   : > { %v258_v0 = vadd.f32 %v254_v63, %v250_v60 }
 0x1c1   : > { %v261_v1 = vrot.slane %v257_v62, 1  ;;  %v268_v2 = vrot.slane %v257_v62, 2  ;;  %v275_v8 = vrot.slane %v257_v62, 3  ;;  %v282_v13 = vrot.slane %v257_v62, 4 }
 0x1c2   : > { %v262_v3 = vrot.slane %v258_v0, 1  ;;  %v269_v4 = vrot.slane %v258_v0, 2  ;;  %v276_v6 = vrot.slane %v258_v0, 3  ;;  %v283_v11 = vrot.slane %v258_v0, 4 }
 0x1c4   : > { %v267_v5 = vadd.f32 %v262_v3, %v258_v0  ;;  %v263_v7 = vsel %vm175_vm0, %v261_v1, %v262_v3  ;;  %v270_v12 = vsel %vm183_vm1, %v268_v2, %v269_v4  ;;  %v277_v16 = vsel %vm191_vm2, %v275_v8, %v276_v6 }
 0x1c5   : > { %v266_v9 = vadd.f32 %v263_v7, %v257_v62  ;;  %v284_v19 = vsel %vm199_vm3, %v282_v13, %v283_v11 }
 0x1c6   : > { %v274_v10 = vadd.f32 %v269_v4, %v267_v5 }
 0x1c7   : > { %v273_v14 = vadd.f32 %v270_v12, %v266_v9 }
 0x1c8   : > { %v281_v15 = vadd.f32 %v276_v6, %v274_v10 }
 0x1c9   : > { %v280_v17 = vadd.f32 %v277_v16, %v273_v14 }
 0x1ca   : > { %v288_v18 = vadd.f32 %v283_v11, %v281_v15 }
 0x1cb   : > { %v287_v20 = vadd.f32 %v284_v19, %v280_v17 }
 0x1cc   : > { %v290_v21 = vmul.f32 0.04, %v288_v18 }
 0x1cd   : > { %v289_v22 = vmul.f32 0.04, %v287_v20 }
 0x1ce   : > { %295 = vrot.lane.b32.xlu1 %v290_v21, %s555_s25 }
 0x1cf   : > { %293 = vrot.lane.b32.xlu0 %v289_v22, %s555_s25 }
 0x240   : > { %v296_v23 = vpop.permute.xlu1 %295 }
 0x241   : > { %302 = vst.msk [vmem:[%s134_s4 + $0x6] sm:$0x3] %vm301_vm5, %v296_v23  ;;  %v294_v24 = vpop.permute.xlu0 %293 }
 0x242   : > { %300 = vst.msk [vmem:[%s134_s4 - $0x2] sm:$0xfc] %vm299_vm6, %v294_v24 }
 0x243   : > { %497 = shalt.err (!%p494_p2)
}
 0x244   : > { %s498_s23 = scalar_lea.hbm %s722_s14, 128  ;;  %s502_s30 = scalar_lea.hbm %s767_s1, 256 }
 0x245   : > { %p499_p4 = scmp.ne.s32.totalorder %s722_s14, %s498_s23  ;;  %p503_p9 = scmp.lt.u32.totalorder %s722_s14, %s767_s1 }
 0x246   : > { %p504_p1 = scmp.lt.u32.totalorder %s502_s30, %s498_s23  ;;  %p506_p6 = scmp.lt.u32.totalorder %s498_s23, %s722_s14 }
 0x247   : > { %p500_p5 = pnand %p499_p4, %p774_p11 }
 0x248   : > { %p505_p3 = por %p504_p1, %p503_p9 }
 0x249   : > { %p501_p7 = pneg %p500_p5 }
 0x24a   : > { %p507_p12 = por %p506_p6, %p505_p3 }
 0x24c   : > { %p508_p13 = pnand %p507_p12, %p501_p7 }
 0x24e   : > { %511 = shalt.err (!%p508_p13)
}
 0x24f   : > { %403 = dma.vmem_to_hbm [thread:$0]  (%p774_p11), %s724_s5, 128, %s722_s14, %s304_s16  }
 0x250 PF: > { %s329_s28 = sand.u32 1, %s538_s6   ;;  %p775_p8 = scmp.ne.s32.totalorder %s772_s19, 0 }
 0x251   : > { %p776_p10 = scmp.ge.s32.totalorder %s550_s9, 2  ;;  %s330_s17 = scalar_lea.sflag [#allocation4], %s329_s28 }
 0x253   : > { %p410_p0 = pnand %p776_p10, %p775_p8 }
 0x255   : > { %533 = dma.done.wait (!%p410_p0), %s330_s17, 128  }
 0x256   : > { %535 = vsyncadd (!%p410_p0), %s330_s17, 4294967168  ;;  %p14_p2 = scmp.ge.s32.totalorder %s596_s12, 4   ;;  %s777_s6 = smov %s542_s7 }
 0x257   : > { %s778_s7 = smov %s546_s8  ;;  %s779_s8 = smov %s608_s15 }
 0x258   : > { %s780_s9 = smov %s596_s12  ;;  %16 = sbr.rel (!%p14_p2) target bundleno = 5 (0x5), region = 69 }
 0x25f   :  { %335 = vsyncpa [#allocation3], 1 }
 0x260   :  { %337 = vsyncpa [#allocation3 + $0x1], 1 }
 0x261   :  { %338 = vsyncpa [#allocation4], 1 }
 0x262   :  { %340 = vsyncpa [#allocation4 + $0x1], 1 }

</bundles_post_ra>
